<compile_context>
chip_gen: v5e
topology: v5e:2x2
jax: 0.10.0
libtpu: 0.0.40
codegen_flags: <defaults>
</compile_context>

<pallas_src>
import math

import jax
import jax.numpy as jnp
from jax.experimental import pallas as pl
from jax.experimental.pallas import tpu as pltpu


def conv2d_fold_kernel(x_ref, w_ref, o_ref):
    # x_ref: (tm, Cpad)     im2col'd rows + ones bias-lane + zero lane-padding
    # w_ref: (Cpad, WCout)  block-Toeplitz weight with the bias folded in
    # o_ref: (tm, WCout)    lane-dense 2-D output slab
    o_ref[...] = jnp.dot(
        x_ref[...], w_ref[...], preferred_element_type=jnp.float32
    ).astype(o_ref.dtype)


def _build_folded_weight(w_oihw, bias, *, Wp, W, Cpad):
    """(Cpad, W*Cout) matrix folding kh, kw, the W output positions and the bias.

    row = kh*Wp*Cin + wp*Cin + ci  (nonzero only where wp = w + kw),
    row K*Wp*Cin = bias lane, remaining rows = zero padding,
    col = w*Cout + co.
    """
    Cout, Cin, K, _ = w_oihw.shape
    w_hwio = jnp.transpose(w_oihw, (2, 3, 1, 0)).astype(jnp.float32)  # (K,K,Cin,Cout)
    B = jnp.zeros((K, Wp, Cin, W, Cout), jnp.float32)
    w_idx = jnp.arange(W)
    for kw in range(K):
        # result[w, kh, ci, co] <- w_hwio[kh, kw, ci, co] placed at B[kh, w+kw, ci, w, co]
        # (advanced indices separated by a slice -> broadcast dim W moves to the front).
        B = B.at[:, w_idx + kw, :, w_idx, :].set(w_hwio[:, kw])
    B = B.reshape(K * Wp * Cin, W * Cout)
    bias_row = jnp.tile(bias.astype(jnp.float32), W).reshape(1, W * Cout)
    pad = jnp.zeros((Cpad - K * Wp * Cin - 1, W * Cout), jnp.float32)
    return jnp.concatenate([B, bias_row, pad], axis=0)


def _pick_row_block(M, row_bytes, target_bytes=2 * 1024 * 1024):
    """Rows (matmul M dim) per grid step.

    Small problems: one grid step (fills the MXU M dimension, zero per-step overhead,
    no megacore split of sub-microsecond work).  Large problems: largest divisor of M
    that is a sublane multiple and keeps the per-step input block near ~2 MiB, so the
    auto-pipeline hits the HBM roofline while staying far below VMEM on v5e/v6e/v7x.
    """
    if M * row_bytes <= 4 * target_bytes:
        return M
    best = M
    for tm in range(8, M, 8):
        if M % tm == 0 and tm * row_bytes <= target_bytes:
            best = tm
    return best


def conv2d_same(x_nchw, w_oihw, bias=None, *, compute_dtype=jnp.bfloat16,
                row_block=None):
    """CustomConv2d forward: nn.Conv2d(stride=1, padding=(K-1)//2, bias), NCHW in/out."""
    N, Cin, H, W = x_nchw.shape
    Cout, Cin_w, K, K2 = w_oihw.shape
    assert Cin_w == Cin and K == K2
    assert K % 2 == 1, "symmetric SAME padding requires an odd kernel size"
    if bias is None:
        bias = jnp.zeros((Cout,), jnp.float32)
    p = (K - 1) // 2
    Hp, Wp = H + 2 * p, W + 2 * p

    # ---- wrapper-side layout glue (plain XLA, outside the kernel) ----
    x_nhwc = jnp.transpose(x_nchw, (0, 2, 3, 1))
    xp = jnp.pad(x_nhwc, ((0, 0), (p, p), (p, p), (0, 0)))            # (N,Hp,Wp,Cin)
    # H-only im2col: fold the K kh taps into the contraction axis.
    rows = [xp[:, kh:kh + H].reshape(N, H, Wp * Cin) for kh in range(K)]
    x_cat = jnp.concatenate(rows, axis=-1)                            # (N,H,K*Wp*Cin)
    Creal = K * Wp * Cin
    Cpad = ((Creal + 1 + 127) // 128) * 128                           # 217 -> 256 here
    ones = jnp.ones((N, H, 1), x_cat.dtype)                           # bias lane
    zeros = jnp.zeros((N, H, Cpad - Creal - 1), x_cat.dtype)
    x_flat = jnp.concatenate([x_cat, ones, zeros], axis=-1)
    x_flat = x_flat.reshape(N * H, Cpad).astype(compute_dtype)

    w_big = _build_folded_weight(w_oihw, bias, Wp=Wp, W=W, Cpad=Cpad)
    w_big = w_big.astype(compute_dtype)

    M = N * H
    WCout = W * Cout
    row_bytes = Cpad * jnp.dtype(compute_dtype).itemsize
    tm = _pick_row_block(M, row_bytes) if row_block is None else row_block
    assert M % tm == 0

    out_flat = pl.pallas_call(
        conv2d_fold_kernel,
        out_shape=jax.ShapeDtypeStruct((M, WCout), x_nchw.dtype),
        grid_spec=pltpu.PrefetchScalarGridSpec(
            num_scalar_prefetch=0,
            grid=(M // tm,),
            in_specs=[
                pl.BlockSpec((tm, Cpad), lambda i: (i, 0)),
                pl.BlockSpec((Cpad, WCout), lambda i: (0, 0)),   # weight stays resident
            ],
            out_specs=pl.BlockSpec((tm, WCout), lambda i: (i, 0)),
        ),
        compiler_params=pltpu.CompilerParams(
            dimension_semantics=("parallel",),
            vmem_limit_bytes=48 * 1024 * 1024,
        ),
    )(x_flat, w_big)

    out = out_flat.reshape(N, H, W, Cout)
    return jnp.transpose(out, (0, 3, 1, 2))                           # back to NCHW


def ref_conv2d(x_nchw, w_oihw, bias):
    """Pure-JAX reference matching the PyTorch forward exactly."""
    K = w_oihw.shape[2]
    p = (K - 1) // 2
    y = jax.lax.conv_general_dilated(
        x_nchw, w_oihw, window_strides=(1, 1),
        padding=((p, p), (p, p)),
        dimension_numbers=("NCHW", "OIHW", "NCHW"))
    return y + bias.reshape(1, -1, 1, 1)


if __name__ == "__main__":
    N, Cin, Cout, H, W, K = 2, 4, 8, 16, 16, 3

    key = jax.random.PRNGKey(0)
    kx, kw_, kb = jax.random.split(key, 3)
    x = jax.random.normal(kx, (N, Cin, H, W), dtype=jnp.float32)

    # Deterministic parameter init (matches nn.Conv2d default bound 1/sqrt(fan_in)).
    fan_in = Cin * K * K
    bound = 1.0 / math.sqrt(fan_in)
    weight = jax.random.uniform(kw_, (Cout, Cin, K, K),
                                minval=-bound, maxval=bound, dtype=jnp.float32)
    bias = jax.random.uniform(kb, (Cout,),
                              minval=-bound, maxval=bound, dtype=jnp.float32)

    ref = ref_conv2d(x, weight, bias)

    # f32 MXU inputs: strict-ish check against the reference.
    out_f32 = jax.block_until_ready(conv2d_same(x, weight, bias,
                                                compute_dtype=jnp.float32))
    assert out_f32.shape == (N, Cout, H, W), out_f32.shape
    assert jnp.allclose(out_f32, ref, atol=1e-3, rtol=1e-3), \
        float(jnp.max(jnp.abs(out_f32 - ref)))

    # bf16 MXU inputs (default; recommended on v5e/v6e/v7x, f32 accumulation): loose check.
    out_bf16 = jax.block_until_ready(conv2d_same(x, weight, bias))
    assert out_bf16.shape == (N, Cout, H, W), out_bf16.shape
    assert jnp.allclose(out_bf16, ref, atol=5e-2, rtol=5e-2), \
        float(jnp.max(jnp.abs(out_bf16 - ref)))

    print("KERNEL_OK")
</pallas_src>

<mosaic_0001>
module attributes {stable_mosaic.version = 11 : i64} {
  func.func @conv2d_fold_kernel(%arg0: i32, %arg1: memref<32x256xf32, #tpu.memory_space<vmem>>, %arg2: memref<256x128xf32, #tpu.memory_space<vmem>>, %arg3: memref<32x128xf32, #tpu.memory_space<vmem>>) attributes {dimension_semantics = [#tpu.dimension_semantics<parallel>], iteration_bounds = array<i64: 1>, scalar_prefetch = 0 : i64, scratch_operands = 0 : i64, tpu.core_type = #tpu.core_type<tc>, window_params = [{transform_indices = @transform_0, window_bounds = array<i64: 32, 256>}, {pipeline_mode = #tpu.pipeline_mode<synchronous>, transform_indices = @transform_1, window_bounds = array<i64: 256, 128>}, {transform_indices = @transform_2, window_bounds = array<i64: 32, 128>}]} {
    %c0 = arith.constant 0 : index
    %c0_0 = arith.constant 0 : index
    %0 = vector.load %arg1[%c0, %c0_0] : memref<32x256xf32, #tpu.memory_space<vmem>>, vector<32x256xf32>
    %c0_1 = arith.constant 0 : index
    %c0_2 = arith.constant 0 : index
    %1 = vector.load %arg2[%c0_1, %c0_2] : memref<256x128xf32, #tpu.memory_space<vmem>>, vector<256x128xf32>
    %cst = arith.constant dense<0.000000e+00> : vector<32x128xf32>
    %2 = tpu.matmul %0, %1, %cst {dimension_numbers = #tpu.dot_dimension_numbers<[1], [0], [0], [1], [0, 0, 1, 1], [], []>} : vector<32x256xf32>, vector<256x128xf32>, vector<32x128xf32> -> vector<32x128xf32>
    %c0_3 = arith.constant 0 : index
    %c0_4 = arith.constant 0 : index
    %3 = vector.load %arg3[%c0_3, %c0_4] : memref<32x128xf32, #tpu.memory_space<vmem>>, vector<32x128xf32>
    tpu.vector_store %arg3[%c0_3, %c0_4], %2 {strides = array<i32>} : memref<32x128xf32, #tpu.memory_space<vmem>>, vector<32x128xf32>,
    return
  }
  func.func @transform_0(%arg0: i32) -> (i32, i32) {
    %c0_i32 = arith.constant 0 : i32
    %c0_i32_0 = arith.constant 0 : i32
    return %arg0, %c0_i32 : i32, i32
  }
  func.func @transform_1(%arg0: i32) -> (i32, i32) {
    %c0_i32 = arith.constant 0 : i32
    %c0_i32_0 = arith.constant 0 : i32
    %c0_i32_1 = arith.constant 0 : i32
    return %c0_i32, %c0_i32_0 : i32, i32
  }
  func.func @transform_2(%arg0: i32) -> (i32, i32) {
    %c0_i32 = arith.constant 0 : i32
    %c0_i32_0 = arith.constant 0 : i32
    return %arg0, %c0_i32 : i32, i32
  }
}

</mosaic_0001>

<bundles_post_ra>
// kernel: tpu_custom_call.1
= control target key start
LH: loop header
LB: loop body
LE: loop exit
PB: predicated region body
PF: predicated region fallthrough
CT: control target
= control target key end

     0   :  { %7 = vsyncpa [#allocation3], 0  ;;  %s320_s0 = inlined_call_operand.hbm [shape: f32[32,256], index: 0, kind: input, shape index: {}]   ;;  %s321_s1 = inlined_call_operand.hbm [shape: f32[256,128], index: 1, kind: input, shape index: {}]   ;;  %s322_s2 = inlined_call_operand.hbm [shape: f32[32,128], index: 2, kind: output, shape index: {}]  }
   0x1   :  { %8 = vsyncpa [#allocation6], 0 }
   0x2   :  { %9 = vsyncpa [#allocation4], 0  ;;  %s14_s11 = sshll.u32 %s320_s0, 4  ;;  %s283_s12 = smov [#allocation2]   ;;  %s15_s11 = int_to_ptr.hbm [resolvable:$true] %s14_s11 }
   0x3   :  { %s16_s13 = sshll.u32 %s283_s12, 4  ;;  %s27_s16 = sshll.u32 %s321_s1, 4  ;;  %s17_s13 = int_to_ptr.vmem [resolvable:$true] %s16_s13  ;;  %s28_s16 = int_to_ptr.hbm [resolvable:$true] %s27_s16 }
   0x4   :  { %s284_s17 = smov 256   ;;  %s285_s18 = smov 16  }
   0x5   :  { %22 = dma.hbm_to_vmem [thread:$0]  %s15_s11, 1024, %s17_s13, [#allocation3], %s284_s17, %s284_s17, %s285_s18  }
   0x6   :  { %s286_s19 = smov [#allocation5]   ;;  %s287_s21 = smov 128  }
   0x7   :  { %s29_s20 = sshll.u32 %s286_s19, 4  ;;  %s288_s22 = smov 8   ;;  %s30_s20 = int_to_ptr.vmem [resolvable:$true] %s29_s20 }
   0x8   :  { %35 = dma.hbm_to_vmem [thread:$0]  %s28_s16, 4096, %s30_s20, [#allocation6], %s287_s21, %s287_s21, %s288_s22  }
   0x9   :  { %277 = dma.done.wait [#allocation3], 1024  }
   0xa   :  { %278 = vsyncadd [#allocation3], 4294966272 }
   0xb   :  { %279 = dma.done.wait [#allocation6], 4096  }
   0xc   :  { %280 = vsyncadd [#allocation6], 4294963200  ;;  %v67_v0 = vld [vmem:[#allocation5 + $0x78] sm:$0xff]  ;;  %v66_v2 = vld [vmem:[#allocation5 + $0x70] sm:$0xff]  ;;  %s289_s0 = smov [#allocation7]   ;;  %s152_s25 = sshll.u32 %s322_s2, 4  ;;  %s153_s25 = int_to_ptr.hbm [resolvable:$true] %s152_s25 }
   0xd   :  { %v83_v1 = vld [vmem:[#allocation5 + $0xf8] sm:$0xff]  ;;  %166 = vmatpush.msra.mxu2 %v67_v0  ;;  %v82_v3 = vld [vmem:[#allocation5 + $0xf0] sm:$0xff]  ;;  %v65_v4 = vld [vmem:[#allocation5 + $0x68] sm:$0xff]  ;;  %84 = vmatpush.msra.mxu0 %v67_v0  ;;  %s150_s1 = sshll.u32 %s289_s0, 4  ;;  %s151_s1 = int_to_ptr.vmem [resolvable:$true] %s150_s1 }
   0xe   :  { %182 = vmatpush.msra.mxu3 %v83_v1  ;;  %v81_v5 = vld [vmem:[#allocation5 + $0xe8] sm:$0xff]  ;;  %113 = vmatpush.msra.mxu1 %v83_v1  ;;  %v64_v6 = vld [vmem:[#allocation5 + $0x60] sm:$0xff]  ;;  %v63_v8 = vld [vmem:[#allocation5 + $0x58] sm:$0xff] }
   0xf   :  { %167 = vmatpush.msra.mxu2 %v66_v2  ;;  %v80_v7 = vld [vmem:[#allocation5 + $0xe0] sm:$0xff]  ;;  %85 = vmatpush.msra.mxu0 %v66_v2  ;;  %v79_v9 = vld [vmem:[#allocation5 + $0xd8] sm:$0xff]  ;;  %v62_v10 = vld [vmem:[#allocation5 + $0x50] sm:$0xff] }
  0x10   :  { %183 = vmatpush.msra.mxu3 %v82_v3  ;;  %114 = vmatpush.msra.mxu1 %v82_v3  ;;  %v78_v11 = vld [vmem:[#allocation5 + $0xd0] sm:$0xff]  ;;  %v61_v12 = vld [vmem:[#allocation5 + $0x48] sm:$0xff]  ;;  %v60_v14 = vld [vmem:[#allocation5 + $0x40] sm:$0xff] }
  0x11   :  { %168 = vmatpush.msra.mxu2 %v65_v4  ;;  %86 = vmatpush.msra.mxu0 %v65_v4  ;;  %v77_v13 = vld [vmem:[#allocation5 + $0xc8] sm:$0xff]  ;;  %v76_v15 = vld [vmem:[#allocation5 + $0xc0] sm:$0xff]  ;;  %v59_v16 = vld [vmem:[#allocation5 + $0x38] sm:$0xff] }
  0x12   :  { %184 = vmatpush.msra.mxu3 %v81_v5  ;;  %115 = vmatpush.msra.mxu1 %v81_v5  ;;  %v75_v17 = vld [vmem:[#allocation5 + $0xb8] sm:$0xff]  ;;  %v58_v18 = vld [vmem:[#allocation5 + $0x30] sm:$0xff]  ;;  %v57_v20 = vld [vmem:[#allocation5 + $0x28] sm:$0xff] }
  0x13   :  { %169 = vmatpush.msra.mxu2 %v64_v6  ;;  %87 = vmatpush.msra.mxu0 %v64_v6  ;;  %v74_v19 = vld [vmem:[#allocation5 + $0xb0] sm:$0xff]  ;;  %v73_v21 = vld [vmem:[#allocation5 + $0xa8] sm:$0xff]  ;;  %v56_v22 = vld [vmem:[#allocation5 + $0x20] sm:$0xff] }
  0x14   :  { %185 = vmatpush.msra.mxu3 %v80_v7  ;;  %116 = vmatpush.msra.mxu1 %v80_v7  ;;  %v72_v23 = vld [vmem:[#allocation5 + $0xa0] sm:$0xff]  ;;  %v55_v24 = vld [vmem:[#allocation5 + $0x18] sm:$0xff]  ;;  %v54_v26 = vld [vmem:[#allocation5 + $0x10] sm:$0xff] }
  0x15   :  { %170 = vmatpush.msra.mxu2 %v63_v8  ;;  %88 = vmatpush.msra.mxu0 %v63_v8  ;;  %v71_v25 = vld [vmem:[#allocation5 + $0x98] sm:$0xff]  ;;  %v70_v27 = vld [vmem:[#allocation5 + $0x90] sm:$0xff]  ;;  %v53_v28 = vld [vmem:[#allocation5 + $0x8] sm:$0xff] }
  0x16   :  { %186 = vmatpush.msra.mxu3 %v79_v9  ;;  %117 = vmatpush.msra.mxu1 %v79_v9  ;;  %v69_v29 = vld [vmem:[#allocation5 + $0x88] sm:$0xff]  ;;  %v52_v30 = vld [vmem:[#allocation5] sm:$0xff]  ;;  %v50_v36 = vld [vmem:[#allocation2 + $0x30] sm:$0xff] }
  0x17   :  { %171 = vmatpush.msra.mxu2 %v62_v10  ;;  %89 = vmatpush.msra.mxu0 %v62_v10  ;;  %v68_v31 = vld [vmem:[#allocation5 + $0x80] sm:$0xff]  ;;  %v49_v33 = vld [vmem:[#allocation2 + $0x28] sm:$0xff]  ;;  %v51_v37 = vld [vmem:[#allocation2 + $0x38] sm:$0xff] }
  0x18   :  { %187 = vmatpush.msra.mxu3 %v78_v11  ;;  %118 = vmatpush.msra.mxu1 %v78_v11  ;;  %v48_v32 = vld [vmem:[#allocation2 + $0x20] sm:$0xff]  ;;  %v45_v35 = vld [vmem:[#allocation2 + $0x8] sm:$0xff]  ;;  %v46_v38 = vld [vmem:[#allocation2 + $0x10] sm:$0xff] }
  0x19   :  { %172 = vmatpush.msra.mxu2 %v61_v12  ;;  %90 = vmatpush.msra.mxu0 %v61_v12  ;;  %v44_v34 = vld [vmem:[#allocation2] sm:$0xff]  ;;  %v47_v39 = vld [vmem:[#allocation2 + $0x18] sm:$0xff] }
  0x1a   :  { %188 = vmatpush.msra.mxu3 %v77_v13  ;;  %119 = vmatpush.msra.mxu1 %v77_v13 }
  0x1b   :  { %173 = vmatpush.msra.mxu2 %v60_v14  ;;  %91 = vmatpush.msra.mxu0 %v60_v14 }
  0x1c   :  { %189 = vmatpush.msra.mxu3 %v76_v15  ;;  %120 = vmatpush.msra.mxu1 %v76_v15 }
  0x1d   :  { %174 = vmatpush.msra.mxu2 %v59_v16  ;;  %92 = vmatpush.msra.mxu0 %v59_v16 }
  0x1e   :  { %190 = vmatpush.msra.mxu3 %v75_v17  ;;  %121 = vmatpush.msra.mxu1 %v75_v17 }
  0x1f   :  { %175 = vmatpush.msra.mxu2 %v58_v18  ;;  %93 = vmatpush.msra.mxu0 %v58_v18 }
  0x20   :  { %191 = vmatpush.msra.mxu3 %v74_v19  ;;  %122 = vmatpush.msra.mxu1 %v74_v19 }
  0x21   :  { %176 = vmatpush.msra.mxu2 %v57_v20  ;;  %94 = vmatpush.msra.mxu0 %v57_v20 }
  0x22   :  { %192 = vmatpush.msra.mxu3 %v73_v21  ;;  %123 = vmatpush.msra.mxu1 %v73_v21 }
  0x23   :  { %177 = vmatpush.msra.mxu2 %v56_v22  ;;  %95 = vmatpush.msra.mxu0 %v56_v22 }
  0x24   :  { %193 = vmatpush.msra.mxu3 %v72_v23  ;;  %124 = vmatpush.msra.mxu1 %v72_v23 }
  0x25   :  { %178 = vmatpush.msra.mxu2 %v55_v24  ;;  %96 = vmatpush.msra.mxu0 %v55_v24 }
  0x26   :  { %194 = vmatpush.msra.mxu3 %v71_v25  ;;  %125 = vmatpush.msra.mxu1 %v71_v25 }
  0x27   :  { %179 = vmatpush.msra.mxu2 %v54_v26  ;;  %97 = vmatpush.msra.mxu0 %v54_v26 }
  0x28   :  { %195 = vmatpush.msra.mxu3 %v70_v27  ;;  %126 = vmatpush.msra.mxu1 %v70_v27 }
  0x29   :  { %180 = vmatpush.msra.mxu2 %v53_v28  ;;  %98 = vmatpush.msra.mxu0 %v53_v28 }
  0x2a   :  { %196 = vmatpush.msra.mxu3 %v69_v29  ;;  %127 = vmatpush.msra.mxu1 %v69_v29 }
  0x2b   :  { %181 = vmatpush.msra.mxu2 %v52_v30  ;;  %99 = vmatpush.msra.mxu0 %v52_v30 }
  0x2c   :  { %197 = vmatpush.msra.mxu3 %v68_v31  ;;  %106 = vmatmul.f32.vlgmr.msra.gmra.mxu2 %v48_v32 }
  0x2d   :  { %135 = vmatmul.f32.vlgmr.msra.gmra.mxu3 %v49_v33  ;;  %128 = vmatpush.msra.mxu1 %v68_v31 }
  0x2e   :  { %100 = vmatmul.f32.vlgmr.msra.gmra.mxu0 %v44_v34  ;;  %129 = vmatmul.f32.vlgmr.msra.gmra.mxu1 %v45_v35 }
  0x34   :  { %109 = vmatmul.f32.gmra.mxu2 %v50_v36 }
  0x35   :  { %138 = vmatmul.f32.gmra.mxu3 %v51_v37 }
  0x36   :  { %103 = vmatmul.f32.gmra.mxu0 %v46_v38  ;;  %132 = vmatmul.f32.gmra.mxu1 %v47_v39 }
  0xab   :  { %v101_v40 = vpop.f32.mrf.mxu0  ;;  %v130_v41 = vpop.f32.mrf.mxu1 }
  0xac   :  { %v131_v42 = vadd.f32 %v130_v41, %v101_v40 }
  0xae   :  { %142 = vst [vmem:[#allocation7] sm:$0xff] %v131_v42 }
  0xaf   :  { %v107_v43 = vpop.f32.mrf.mxu2 }
  0xb0   :  { %v136_v44 = vpop.f32.mrf.mxu3 }
  0xb1   :  { %v137_v45 = vadd.f32 %v136_v44, %v107_v43 }
  0xb3   :  { %144 = vst [vmem:[#allocation7 + $0x10] sm:$0xff] %v137_v45  ;;  %v104_v46 = vpop.f32.mrf.mxu0  ;;  %v133_v47 = vpop.f32.mrf.mxu1 }
  0xb4   :  { %v134_v48 = vadd.f32 %v133_v47, %v104_v46 }
  0xb6   :  { %143 = vst [vmem:[#allocation7 + $0x8] sm:$0xff] %v134_v48 }
  0xb7   :  { %v110_v49 = vpop.f32.mrf.mxu2 }
  0xb8   :  { %v139_v50 = vpop.f32.mrf.mxu3 }
  0xb9   :  { %v140_v51 = vadd.f32 %v139_v50, %v110_v49 }
  0xbb   :  { %145 = vst [vmem:[#allocation7 + $0x18] sm:$0xff] %v140_v51 }
  0xbc   :  { %158 = dma.vmem_to_hbm [thread:$0]  %s151_s1, 512, %s153_s25, [#allocation4], %s287_s21, %s287_s21, %s288_s22  }
  0xbd   :  { %281 = dma.done.wait [#allocation4], 512  }
  0xbe   :  { %282 = vsyncadd [#allocation4], 4294966784 }
  0xbf   :  { %163 = vsyncpa [#allocation3], 1 }
  0xc0   :  { %164 = vsyncpa [#allocation6], 1 }
  0xc1   :  { %165 = vsyncpa [#allocation4], 1 }

</bundles_post_ra>
